<compile_context>
chip_gen: v6e
topology: v6e:2x2x1
jax: 0.10.0
libtpu: 0.0.40
codegen_flags: <defaults>
</compile_context>

<pallas_src>
import functools

import jax
import jax.numpy as jnp
import numpy as np
from jax import lax
from jax.experimental import pallas as pl
from jax.experimental.pallas import tpu as pltpu


def _round_up(x, m):
    return (x + m - 1) // m * m


# ----------------------------------------------------------------------------
# Base box head: y = relu(flatten(x) @ W + b)  — tiled MXU matmul.
# Grid = (M/tm, K/tk): the full padded output width is one tile, so each
# activation block is read from HBM exactly once.
# ----------------------------------------------------------------------------
def _base_box_head_kernel(x_ref, w_ref, b_ref, o_ref, acc_ref):
    @pl.when(pl.program_id(1) == 0)
    def _():
        acc_ref[...] = jnp.zeros_like(acc_ref)

    acc_ref[...] += jnp.dot(x_ref[...], w_ref[...],
                            preferred_element_type=jnp.float32)

    @pl.when(pl.program_id(1) == pl.num_programs(1) - 1)
    def _():
        o_ref[...] = jnp.maximum(acc_ref[...] + b_ref[...],
                                 0.0).astype(o_ref.dtype)


def base_box_head(x_nchw, prep_base, *, tm=128,
                  vmem_limit_bytes=32 * 1024 * 1024):
    wp, bp = prep_base["w"], prep_base["b"]          # pre-padded, pre-cast
    k, n = prep_base["k"], prep_base["n"]
    tk = prep_base["tk"]
    kp, np_ = wp.shape

    m = x_nchw.shape[0]
    mp = _round_up(m, 8)
    tm = min(tm, mp)
    mp = _round_up(mp, tm)

    # single fused pad + bf16 cast of the activations (the only per-call prep)
    x = x_nchw.reshape(m, -1)
    xp = jnp.pad(x, ((0, mp - m), (0, kp - k))).astype(jnp.bfloat16)

    out = pl.pallas_call(
        _base_box_head_kernel,
        out_shape=jax.ShapeDtypeStruct((mp, np_), jnp.bfloat16),
        grid_spec=pltpu.PrefetchScalarGridSpec(
            num_scalar_prefetch=0,
            grid=(mp // tm, kp // tk),
            in_specs=[
                pl.BlockSpec((tm, tk), lambda i, kk: (i, kk)),
                pl.BlockSpec((tk, np_), lambda i, kk: (kk, 0)),
                pl.BlockSpec((1, np_), lambda i, kk: (0, 0)),
            ],
            out_specs=pl.BlockSpec((tm, np_), lambda i, kk: (i, 0)),
            scratch_shapes=[pltpu.VMEM((tm, np_), jnp.float32)],
        ),
        compiler_params=pltpu.CompilerParams(
            dimension_semantics=("parallel", "arbitrary"),
            vmem_limit_bytes=vmem_limit_bytes),
    )(xp, wp, bp)
    return out[:m, :n]


# ----------------------------------------------------------------------------
# Fused attribute + relationship EFRM kernel (flattened image x row-tile grid).
# Shares the pairwise-distance tensor AND the first-layer matmul between both
# branches.
# ----------------------------------------------------------------------------
def _efrm_branch_tail(h1_bf, xall_bf, col_mask, ti, n,
                      w2, b2, w3, b3, w4, wt, bt):
    # remaining 2 ReLU layers of the scorer MLP: bf16 MXU, f32 accumulate
    h = jnp.dot(h1_bf, w2[...], preferred_element_type=jnp.float32) + b2[...]
    h = jnp.maximum(h, 0.0)
    h = jnp.dot(h.astype(jnp.bfloat16), w3[...],
                preferred_element_type=jnp.float32) + b3[...]
    h = jnp.maximum(h, 0.0)
    # fc_output (hidden -> 1) as a batched lane reduce in (ti, n, hidden)
    # layout (no (ti*n,1)->(ti,n) relayout).  The scalar bias is dropped:
    # softmax is shift-invariant, so it cannot change the inference output.
    scores = jnp.sum(h.reshape(ti, n, -1) * w4[...].reshape(1, 1, -1), axis=-1)
    # exact row softmax over valid columns only (padded proposals masked out)
    scores = jnp.where(col_mask, scores, -1e30)
    scores = scores - jnp.max(scores, axis=-1, keepdims=True)
    p = jnp.exp(scores)
    inv = pl.reciprocal(jnp.sum(p, axis=-1, keepdims=True))   # exact; tiny op
    tmat = (p * inv).astype(jnp.bfloat16)
    mixed = jnp.dot(tmat, xall_bf, preferred_element_type=jnp.float32)
    return jnp.dot(mixed.astype(jnp.bfloat16), wt[...],
                   preferred_element_type=jnp.float32) + bt[...]


def _efrm_fused_kernel(n_tiles, tile_i,
                       lens_ref, xall_ref, w1c_ref, b1c_ref,
                       w2a, b2a, w3a, b3a, w4a, wta, bta,
                       w2r, b2r, w3r, b3r, w4r, wtr, btr,
                       o_ref):
    g = pl.program_id(0)
    im = g // n_tiles                      # image index
    it = g % n_tiles                       # query-row tile index
    n_valid = lens_ref[im]                 # per-image valid proposal count

    xall_view = xall_ref.at[0]             # (nb_pad, F) bf16, resident per image
    xall = xall_view[...]
    n, f = xall.shape
    start = pl.multiple_of(it * tile_i, tile_i)
    xi = xall_view[pl.ds(start, tile_i), :]   # query rows sliced from the slab

    # Shared pairwise |f_i - f_j| — computed ONCE, directly in bf16.
    dist_bf = jnp.abs(xi[:, None, :] - xall[None, :, :]).reshape(tile_i * n, f)

    # Fused first layer of BOTH branches: the big dist LHS is streamed through
    # the MXU once against concat(w1_attrib | w1_relation).
    h1 = jnp.dot(dist_bf, w1c_ref[...], preferred_element_type=jnp.float32)
    h1 = jnp.maximum(h1 + b1c_ref[...], 0.0).astype(jnp.bfloat16)
    split = w2a.shape[0]
    h1a = h1[:, :split]
    h1r = h1[:, split:]

    col = lax.broadcasted_iota(jnp.int32, (tile_i, n), 1)
    col_mask = col < n_valid

    out_a = _efrm_branch_tail(h1a, xall, col_mask, tile_i, n,
                              w2a, b2a, w3a, b3a, w4a, wta, bta)
    out_r = _efrm_branch_tail(h1r, xall, col_mask, tile_i, n,
                              w2r, b2r, w3r, b3r, w4r, wtr, btr)
    # single contiguous write of the concatenated (attrib | relation) output
    o_ref[0] = jnp.concatenate([out_a, out_r], axis=-1)


_EFRM_WEIGHT_NAMES = ("w1c", "b1c",
                      "w2a", "b2a", "w3a", "b3a", "w4a", "wta", "bta",
                      "w2r", "b2r", "w3r", "b3r", "w4r", "wtr", "btr")


def efrm_fused_batched(lens, x, efrm_prep, *, tile_i,
                       vmem_limit_bytes=64 * 1024 * 1024):
    num_images, nb_pad, f = x.shape
    t_out = efrm_prep["wta"].shape[1]
    n_tiles = nb_pad // tile_i
    weights = [efrm_prep[name] for name in _EFRM_WEIGHT_NAMES]

    # One flattened (image, row-tile) grid axis so megacore sharding always
    # splits a large-extent parallel axis (num_images is often 1 at inference).
    xall_spec = pl.BlockSpec((1, nb_pad, f),
                             lambda g, lens_ref: (g // n_tiles, 0, 0))
    out_spec = pl.BlockSpec((1, tile_i, 2 * t_out),
                            lambda g, lens_ref: (g // n_tiles, g % n_tiles, 0))

    def res_spec(a):  # resident (grid-invariant) weight / bias block
        return pl.BlockSpec(a.shape, lambda g, lens_ref: (0, 0))

    return pl.pallas_call(
        functools.partial(_efrm_fused_kernel, n_tiles, tile_i),
        out_shape=jax.ShapeDtypeStruct((num_images, nb_pad, 2 * t_out),
                                       jnp.float32),
        grid_spec=pltpu.PrefetchScalarGridSpec(
            num_scalar_prefetch=1,
            grid=(num_images * n_tiles,),
            in_specs=[xall_spec] + [res_spec(a) for a in weights],
            out_specs=out_spec,
        ),
        compiler_params=pltpu.CompilerParams(
            dimension_semantics=("parallel",),
            vmem_limit_bytes=vmem_limit_bytes),
    )(lens, x, *weights)


# ----------------------------------------------------------------------------
# One-time parameter preparation (pad + dtype casts hoisted out of the forward)
# ----------------------------------------------------------------------------
def prepare_params(params, *, base_tk=512):
    base_w = jnp.asarray(params["base_w"], jnp.float32)
    base_b = jnp.asarray(params["base_b"], jnp.float32).reshape(1, -1)
    k, n = base_w.shape
    kp = _round_up(k, 128)
    np_ = _round_up(n, 128)
    tk = min(base_tk, kp)
    kp = _round_up(kp, tk)
    prep_base = {
        "w": jnp.pad(base_w, ((0, kp - k), (0, np_ - n))).astype(jnp.bfloat16),
        "b": jnp.pad(base_b, ((0, 0), (0, np_ - n))),
        "k": k, "n": n, "tk": tk,
    }

    a, r = params["attrib"], params["relation"]
    efrm = {
        # both branches' first layers fused along the output dim
        "w1c": jnp.concatenate([a["w1"], r["w1"]], axis=1).astype(jnp.bfloat16),
        "b1c": jnp.concatenate([a["b1"], r["b1"]], axis=1).astype(jnp.float32),
    }
    for tag, p in (("a", a), ("r", r)):
        efrm["w2" + tag] = p["w2"].astype(jnp.bfloat16)
        efrm["b2" + tag] = p["b2"].astype(jnp.float32)
        efrm["w3" + tag] = p["w3"].astype(jnp.bfloat16)
        efrm["b3" + tag] = p["b3"].astype(jnp.float32)
        efrm["w4" + tag] = p["w4"].astype(jnp.float32)      # (1, hidden3)
        efrm["wt" + tag] = p["wt"].astype(jnp.bfloat16)
        efrm["bt" + tag] = p["bt"].astype(jnp.float32)
    return {"base": prep_base, "efrm": efrm}


# ----------------------------------------------------------------------------
# HKRMBoxHead inference forward
# ----------------------------------------------------------------------------
def hkrm_box_head_forward(features_nchw, proposal_lens, prep, *, tile_i=32):
    base = base_box_head(features_nchw, prep["base"])          # (M, F) bf16

    num_images = len(proposal_lens)
    lens_np = np.asarray(proposal_lens, np.int32)
    max_n = int(lens_np.max())

    nb_pad = _round_up(max_n, 8)
    tile_i = _round_up(max(8, min(tile_i, nb_pad)), 8)
    nb_pad = _round_up(nb_pad, tile_i)

    # single gather + mask builds the padded (num_images, nb_pad, F) slab
    offsets = np.concatenate([[0], np.cumsum(lens_np)[:-1]]).astype(np.int32)
    row_idx = offsets[:, None] + np.arange(nb_pad, dtype=np.int32)[None, :]
    valid = np.arange(nb_pad)[None, :] < lens_np[:, None]
    row_idx = np.where(valid, row_idx, 0).astype(np.int32)
    x = jnp.where(jnp.asarray(valid)[..., None], base[jnp.asarray(row_idx)], 0)

    lens = jnp.asarray(lens_np)
    out = efrm_fused_batched(lens, x, prep["efrm"], tile_i=tile_i)

    # single gather strips per-image padding back to the flat layout
    flat_idx = np.concatenate(
        [i * nb_pad + np.arange(int(n_i), dtype=np.int32)
         for i, n_i in enumerate(proposal_lens)]).astype(np.int32)
    return out.reshape(num_images * nb_pad, -1)[jnp.asarray(flat_idx)]


# ----------------------------------------------------------------------------
# Deterministic parameter init (synthetic; mirrors the module's __init__ shapes)
# ----------------------------------------------------------------------------
def _linear(key, din, dout, scale=0.05):
    kw, kb = jax.random.split(key)
    w = scale * jax.random.normal(kw, (din, dout), jnp.float32)
    b = scale * jax.random.normal(kb, (1, dout), jnp.float32)
    return w, b


def init_efrm_params(key, in_feat, layer_sizes=(256, 128, 64), t_out=None):
    t_out = in_feat // 2 if t_out is None else t_out
    k1, k2, k3, k4, k5 = jax.random.split(key, 5)
    w1, b1 = _linear(k1, in_feat, layer_sizes[0])
    w2, b2 = _linear(k2, layer_sizes[0], layer_sizes[1])
    w3, b3 = _linear(k3, layer_sizes[1], layer_sizes[2])
    w4_full, b4 = _linear(k4, layer_sizes[2], 1)     # fc_output: hidden -> 1
    wt, bt = _linear(k5, in_feat, t_out)
    return {
        "w1": w1, "b1": b1,
        "w2": w2, "b2": b2,
        "w3": w3, "b3": b3,
        "w4": w4_full.T,          # (1, hidden3) for broadcast-mul in kernel
        "b4": b4,                 # (1, 1) — used only by the reference
        "wt": wt, "bt": bt,
    }


# ----------------------------------------------------------------------------
# Pure-JAX f32 reference (mirrors the PyTorch forward) for a correctness check
# ----------------------------------------------------------------------------
def _efrm_ref(x, p):
    n, f = x.shape
    dist = jnp.abs(x[:, None, :] - x[None, :, :]).reshape(n * n, f)
    h = jnp.maximum(dist @ p["w1"] + p["b1"], 0.0)
    h = jnp.maximum(h @ p["w2"] + p["b2"], 0.0)
    h = jnp.maximum(h @ p["w3"] + p["b3"], 0.0)
    scores = (h @ p["w4"].T + p["b4"][0, 0]).reshape(n, n)
    tmat = jax.nn.softmax(scores, axis=-1)
    return (tmat @ x) @ p["wt"] + p["bt"]


def _forward_ref(features_nchw, proposal_lens, params):
    m = features_nchw.shape[0]
    base = jnp.maximum(
        features_nchw.reshape(m, -1) @ params["base_w"] + params["base_b"], 0.0)
    outs, start = [], 0
    for n in proposal_lens:
        img = base[start:start + n]
        start += n
        a = _efrm_ref(img, params["attrib"])
        r = _efrm_ref(img, params["relation"])
        outs.append(jnp.concatenate([a, r], axis=1))
    return jnp.concatenate(outs, axis=0)


if __name__ == "__main__":
    key = jax.random.PRNGKey(0)
    k_in, k_base, k_attr, k_rel = jax.random.split(key, 4)

    # small shapes: 2 images x 8 proposals, ROI-pooled features (16, 4, 7, 7)
    num_images = 2
    boxes_per_image = 8
    num_boxes = num_images * boxes_per_image
    c, h, w = 4, 7, 7
    in_features = 32                       # base_box_head.output_shape.channels

    x = jax.random.normal(k_in, (num_boxes, c, h, w), jnp.float32)
    proposal_lens = [boxes_per_image] * num_images

    base_w, base_b = _linear(k_base, c * h * w, in_features)
    params = {
        "base_w": base_w,
        "base_b": base_b,
        "attrib": init_efrm_params(k_attr, in_features),
        "relation": init_efrm_params(k_rel, in_features),
    }
    prep = prepare_params(params)          # one-time pad + bf16 casts

    out = hkrm_box_head_forward(x, proposal_lens, prep)
    out = jax.block_until_ready(out)

    ref = _forward_ref(x, proposal_lens, params)
    assert out.shape == (num_boxes, in_features), out.shape
    max_err = float(jnp.max(jnp.abs(out - ref)))
    # bf16 base features + bf16 matmuls (f32 accumulation) -> loose-ish tolerance
    assert jnp.allclose(out, ref, atol=3e-2, rtol=3e-2), max_err

    print("KERNEL_OK")
</pallas_src>

<mosaic_0001>
module attributes {stable_mosaic.version = 11 : i64} {
  func.func @_base_box_head_kernel(%arg0: i32, %arg1: i32, %arg2: memref<16x256xbf16, #tpu.memory_space<vmem>>, %arg3: memref<256x128xbf16, #tpu.memory_space<vmem>>, %arg4: memref<1x128xf32, #tpu.memory_space<vmem>>, %arg5: memref<16x128xbf16, #tpu.memory_space<vmem>>, %arg6: memref<16x128xf32, #tpu.memory_space<vmem>>) attributes {dimension_semantics = [#tpu.dimension_semantics<parallel>, #tpu.dimension_semantics<arbitrary>], iteration_bounds = array<i64: 1, 1>, scalar_prefetch = 0 : i64, scratch_operands = 1 : i64, tpu.core_type = #tpu.core_type<tc>, window_params = [{transform_indices = @transform_0, window_bounds = array<i64: 16, 256>}, {transform_indices = @transform_1, window_bounds = array<i64: 256, 128>}, {pipeline_mode = #tpu.pipeline_mode<synchronous>, transform_indices = @transform_2, window_bounds = array<i64: 1, 128>}, {transform_indices = @transform_3, window_bounds = array<i64: 16, 128>}]} {
    %c0_i32 = arith.constant 0 : i32
    %0 = arith.cmpi eq, %arg1, %c0_i32 : i32
    %1 = arith.extui %0 : i1 to i32
    %c0_i32_0 = arith.constant 0 : i32
    %2 = arith.cmpi ne, %1, %c0_i32_0 : i32
    scf.if %2 {
      %cst_10 = arith.constant 0.000000e+00 : f32
      %12 = vector.broadcast %cst_10 : f32 to vector<16x128xf32>
      %c0_11 = arith.constant 0 : index
      %c0_12 = arith.constant 0 : index
      %13 = vector.load %arg6[%c0_11, %c0_12] : memref<16x128xf32, #tpu.memory_space<vmem>>, vector<16x128xf32>
      tpu.vector_store %arg6[%c0_11, %c0_12], %12 {strides = array<i32>} : memref<16x128xf32, #tpu.memory_space<vmem>>, vector<16x128xf32>,
    } else {
    }
    %c0 = arith.constant 0 : index
    %c0_1 = arith.constant 0 : index
    %3 = vector.load %arg6[%c0, %c0_1] : memref<16x128xf32, #tpu.memory_space<vmem>>, vector<16x128xf32>
    %c0_2 = arith.constant 0 : index
    %c0_3 = arith.constant 0 : index
    %4 = vector.load %arg2[%c0_2, %c0_3] : memref<16x256xbf16, #tpu.memory_space<vmem>>, vector<16x256xbf16>
    %c0_4 = arith.constant 0 : index
    %c0_5 = arith.constant 0 : index
    %5 = vector.load %arg3[%c0_4, %c0_5] : memref<256x128xbf16, #tpu.memory_space<vmem>>, vector<256x128xbf16>
    %cst = arith.constant dense<0.000000e+00> : vector<16x128xf32>
    %6 = tpu.matmul %4, %5, %cst {dimension_numbers = #tpu.dot_dimension_numbers<[1], [0], [0], [1], [0, 0, 1, 1], [], []>} : vector<16x256xbf16>, vector<256x128xbf16>, vector<16x128xf32> -> vector<16x128xf32>
    %7 = arith.addf %3, %6 : vector<16x128xf32>
    %c0_6 = arith.constant 0 : index
    %c0_7 = arith.constant 0 : index
    %8 = vector.load %arg6[%c0_6, %c0_7] : memref<16x128xf32, #tpu.memory_space<vmem>>, vector<16x128xf32>
    tpu.vector_store %arg6[%c0_6, %c0_7], %7 {strides = array<i32>} : memref<16x128xf32, #tpu.memory_space<vmem>>, vector<16x128xf32>,
    %c0_i32_8 = arith.constant 0 : i32
    %9 = arith.cmpi eq, %arg1, %c0_i32_8 : i32
    %10 = arith.extui %9 : i1 to i32
    %c0_i32_9 = arith.constant 0 : i32
    %11 = arith.cmpi ne, %10, %c0_i32_9 : i32
    scf.if %11 {
      %c0_10 = arith.constant 0 : index
      %c0_11 = arith.constant 0 : index
      %12 = vector.load %arg6[%c0_10, %c0_11] : memref<16x128xf32, #tpu.memory_space<vmem>>, vector<16x128xf32>
      %c0_12 = arith.constant 0 : index
      %c0_13 = arith.constant 0 : index
      %13 = vector.load %arg4[%c0_12, %c0_13] : memref<1x128xf32, #tpu.memory_space<vmem>>, vector<1x128xf32>
      %14 = vector.broadcast %13 : vector<1x128xf32> to vector<16x128xf32>
      %15 = arith.addf %12, %14 : vector<16x128xf32>
      %cst_14 = arith.constant 0.000000e+00 : f32
      %16 = vector.broadcast %cst_14 : f32 to vector<16x128xf32>
      %17 = arith.maximumf %15, %16 : vector<16x128xf32>
      %18 = arith.truncf %17 : vector<16x128xf32> to vector<16x128xbf16>
      %c0_15 = arith.constant 0 : index
      %c0_16 = arith.constant 0 : index
      %19 = vector.load %arg5[%c0_15, %c0_16] : memref<16x128xbf16, #tpu.memory_space<vmem>>, vector<16x128xbf16>
      tpu.vector_store %arg5[%c0_15, %c0_16], %18 {strides = array<i32>} : memref<16x128xbf16, #tpu.memory_space<vmem>>, vector<16x128xbf16>,
    } else {
    }
    return
  }
  func.func @transform_0(%arg0: i32, %arg1: i32) -> (i32, i32) {
    %c0_i32 = arith.constant 0 : i32
    return %arg0, %arg1 : i32, i32
  }
  func.func @transform_1(%arg0: i32, %arg1: i32) -> (i32, i32) {
    %c0_i32 = arith.constant 0 : i32
    %c0_i32_0 = arith.constant 0 : i32
    return %arg1, %c0_i32 : i32, i32
  }
  func.func @transform_2(%arg0: i32, %arg1: i32) -> (i32, i32) {
    %c0_i32 = arith.constant 0 : i32
    %c0_i32_0 = arith.constant 0 : i32
    %c0_i32_1 = arith.constant 0 : i32
    return %c0_i32, %c0_i32_0 : i32, i32
  }
  func.func @transform_3(%arg0: i32, %arg1: i32) -> (i32, i32) {
    %c0_i32 = arith.constant 0 : i32
    %c0_i32_0 = arith.constant 0 : i32
    return %arg0, %c0_i32 : i32, i32
  }
}

</mosaic_0001>

<bundles_post_ra>
// kernel: tpu_custom_call.1
= control target key start
LH: loop header
LB: loop body
LE: loop exit
PB: predicated region body
PF: predicated region fallthrough
CT: control target
= control target key end

     0   :  { %8 = vsyncpa [#allocation4], 0  ;;  %s468_s0 = inlined_call_operand.hbm [shape: bf16[16,256], index: 0, kind: input, shape index: {}]   ;;  %s469_s1 = inlined_call_operand.hbm [shape: bf16[256,128], index: 1, kind: input, shape index: {}]   ;;  %s470_s2 = inlined_call_operand.vmem [shape: f32[1,128], index: 2, kind: input, shape index: {}]   ;;  %s471_s3 = inlined_call_operand.hbm [shape: bf16[16,128], index: 3, kind: output, shape index: {}]  }
   0x1   :  { %9 = vsyncpa [#allocation7], 0 }
   0x2   :  { %10 = vsyncpa [#allocation5], 0  ;;  %s423_s12 = smov [#allocation3]  }
   0x3   :  { %s16_s13 = sshll.u32 %s423_s12, 4  ;;  %s17_s13 = int_to_ptr.vmem [resolvable:$true] %s16_s13 }
   0x4   :  { %s365_s14 = scalar_lea.vmem %s17_s13, 256  ;;  %p370_p1 = scmp.lt.s32.totalorder %s17_s13, %s17_s13 }
   0x5   :  { %p366_p0 = scmp.ne.s32.totalorder %s17_s13, %s365_s14  ;;  %p371_p2 = scmp.lt.s32.totalorder %s365_s14, %s365_s14 }
   0x7   :  { %p372_p3 = por %p371_p2, %p370_p1 }
   0x9   :  { %p373_p4 = pnand %p372_p3, %p366_p0 }
   0xb   :  { %376 = shalt.err (!%p373_p4)
}
   0xc   :  { %s424_s15 = smov 128   ;;  %s425_s16 = smov 8  }
   0xd   :  { %22 = dma.hbm_to_vmem [thread:$0]  %s468_s0, 256, %s17_s13, [#allocation4], %s424_s15, %s424_s15, %s425_s16  }
   0xe   :  { %s426_s19 = smov [#allocation6]  }
   0xf   :  { %s28_s20 = sshll.u32 %s426_s19, 4  ;;  %s29_s20 = int_to_ptr.vmem [resolvable:$true] %s28_s20 }
  0x10   :  { %s385_s21 = scalar_lea.vmem %s29_s20, 2048  ;;  %p390_p6 = scmp.lt.s32.totalorder %s29_s20, %s29_s20 }
  0x11   :  { %p386_p5 = scmp.ne.s32.totalorder %s29_s20, %s385_s21  ;;  %p391_p7 = scmp.lt.s32.totalorder %s385_s21, %s385_s21 }
  0x13   :  { %p392_p8 = por %p391_p7, %p390_p6 }
  0x15   :  { %p393_p9 = pnand %p392_p8, %p386_p5 }
  0x17   :  { %396 = shalt.err (!%p393_p9)
}
  0x18   :  { %s427_s22 = smov 64   ;;  %s428_s23 = smov 4  }
  0x19   :  { %34 = dma.hbm_to_vmem [thread:$0]  %s469_s1, 2048, %s29_s20, [#allocation7], %s427_s22, %s427_s22, %s428_s23  }
  0x1a   :  { %417 = dma.done.wait [#allocation4], 256  }
  0x1b   :  { %418 = vsyncadd [#allocation4], 4294967040 }
  0x1c   :  { %419 = dma.done.wait [#allocation7], 2048  }
  0x1d   :  { %420 = vsyncadd [#allocation7], 4294965248  ;;  %v338_v0 = vld [vmem:[#allocation6 + $0x78] sm:$0xff]   ;;  %v340_v2 = vld [vmem:[#allocation6 + $0x70] sm:$0xff]   ;;  %s429_s26 = smov [#allocation8]  }
  0x1e   :  { %v339_v1 = vld [vmem:[#allocation6 + $0x38] sm:$0xff]   ;;  %309 = vmatprep.subr.bf16.mxu0 %v338_v0  ;;  %v341_v3 = vld [vmem:[#allocation6 + $0x30] sm:$0xff]   ;;  %v342_v4 = vld [vmem:[#allocation6 + $0x68] sm:$0xff]   ;;  %s268_s27 = sshll.u32 %s429_s26, 4  ;;  %s269_s27 = int_to_ptr.vmem [resolvable:$true] %s268_s27 }
  0x1f   :  { %310 = vmatpush3.bf16.msra.mxu0 %v339_v1  ;;  %v343_v5 = vld [vmem:[#allocation6 + $0x28] sm:$0xff]   ;;  %v344_v6 = vld [vmem:[#allocation6 + $0x60] sm:$0xff]   ;;  %v346_v8 = vld [vmem:[#allocation6 + $0x58] sm:$0xff]   ;;  %s397_s28 = scalar_lea.vmem %s269_s27, 128  ;;  %p402_p11 = scmp.lt.s32.totalorder %s269_s27, %s269_s27 }
  0x20   :  { %311 = vmatprep.subr.bf16.mxu0 %v340_v2  ;;  %v345_v7 = vld [vmem:[#allocation6 + $0x20] sm:$0xff]   ;;  %v347_v9 = vld [vmem:[#allocation6 + $0x18] sm:$0xff]   ;;  %v348_v10 = vld [vmem:[#allocation6 + $0x50] sm:$0xff]   ;;  %p398_p10 = scmp.ne.s32.totalorder %s269_s27, %s397_s28  ;;  %p403_p12 = scmp.lt.s32.totalorder %s397_s28, %s397_s28 }
  0x21   :  { %v356_v11 = vld [vmem:[#allocation3 + $0x4] ss:$8 sps:$4 sm:$0xff]   ;;  %v350_v13 = vld [vmem:[#allocation6 + $0x48] sm:$0xff]   ;;  %v352_v15 = vld [vmem:[#allocation6 + $0x40] sm:$0xff]  }
  0x22   :  { %v349_v12 = vld [vmem:[#allocation6 + $0x10] sm:$0xff]   ;;  %224 = vmatprep.mubr.bf16.mxu0 %v356_v11  ;;  %v351_v14 = vld [vmem:[#allocation6 + $0x8] sm:$0xff]   ;;  %v353_v16 = vld [vmem:[#allocation6] sm:$0xff]   ;;  %p404_p13 = por %p403_p12, %p402_p11 }
  0x23   :  { %312 = vmatpush3.bf16.msra.mxu0 %v341_v3  ;;  %v354_v17 = vld [vmem:[#allocation3] ss:$8 sps:$4 sm:$0xff]  }
  0x24   :  { %313 = vmatprep.subr.bf16.mxu0 %v342_v4  ;;  %v299_v21 = vld [vmem:[%s470_s2] ss:$0 sm:$0xff]  ;;  %p405_p0 = pnand %p404_p13, %p398_p10 }
  0x27   :  { %314 = vmatpush3.bf16.msra.mxu0 %v343_v5 }
  0x28   :  { %315 = vmatprep.subr.bf16.mxu0 %v344_v6 }
  0x2b   :  { %316 = vmatpush3.bf16.msra.mxu0 %v345_v7 }
  0x2c   :  { %317 = vmatprep.subr.bf16.mxu0 %v346_v8 }
  0x2f   :  { %318 = vmatpush3.bf16.msra.mxu0 %v347_v9 }
  0x30   :  { %319 = vmatprep.subr.bf16.mxu0 %v348_v10 }
  0x33   :  { %320 = vmatpush3.bf16.msra.mxu0 %v349_v12 }
  0x34   :  { %321 = vmatprep.subr.bf16.mxu0 %v350_v13 }
  0x37   :  { %322 = vmatpush3.bf16.msra.mxu0 %v351_v14 }
  0x38   :  { %323 = vmatprep.subr.bf16.mxu0 %v352_v15 }
  0x3b   :  { %324 = vmatpush3.bf16.msra.mxu0 %v353_v16 }
  0x3e   :  { %225 = vmatmul.mubr.bf16.vlgmr.msra.gmra.mxu0 %v354_v17 }
  0xfe   :  { %v325_v18 = vpop.f32.mrf.mxu0 }
 0x100   :  { %v326_v19 = vpop.f32.mrf.mxu0 }
 0x101   :  { %v327_v20 = vadd.f32 %v326_v19, %v325_v18 }
 0x102   :  { %v328_v22 = vpop.f32.mrf.mxu0 }
 0x103   :  { %v249_v24 = vadd.f32 %v327_v20, %v299_v21 }
 0x104   :  { %v329_v23 = vpop.f32.mrf.mxu0 }
 0x105   :  { %v330_v25 = vadd.f32 %v329_v23, %v328_v22  ;;  %v251_v27 = vmax.f32 %v249_v24, 0.0 }
 0x107   :  { %v250_v26 = vadd.f32 %v330_v25, %v299_v21 }
 0x109   :  { %v252_v28 = vmax.f32 %v250_v26, 0.0 }
 0x10b   :  { %v307_v29 = vpack.c.bf16 %v252_v28, %v251_v27 }
 0x10d   :  { %308 = vst [vmem:[#allocation8] sm:$0xff] %v307_v29  }
 0x10e   :  { %408 = shalt.err (!%p405_p0)
}
 0x10f   :  { %274 = dma.vmem_to_hbm [thread:$0]  %s269_s27, 128, %s471_s3, [#allocation5], %s427_s22, %s427_s22, %s428_s23  }
 0x110   :  { %421 = dma.done.wait [#allocation5], 128  }
 0x111   :  { %422 = vsyncadd [#allocation5], 4294967168 }
 0x112   :  { %278 = vsyncpa [#allocation4], 1 }
 0x113   :  { %279 = vsyncpa [#allocation7], 1 }
 0x114   :  { %280 = vsyncpa [#allocation5], 1 }

</bundles_post_ra>
